<compile_context>
chip_gen: v7x
topology: tpu7x:2x2x1
jax: 0.10.0
libtpu: 0.0.40
codegen_flags: <defaults>
</compile_context>

<pallas_src>
import math
from functools import partial

import jax
import jax.numpy as jnp
from jax.experimental import pallas as pl
from jax.experimental.pallas import tpu as pltpu

LANE = 128   # only the fused-head OUTPUT dim is padded to this (lane-dense store)


def _round_up(x, m):
    return (x + m - 1) // m * m


# --------------------------------------------------------------------------- #
# Kernel: one (tile_m, state_dim) batch tile through the whole dueling MLP.    #
# --------------------------------------------------------------------------- #
def _dueling_kernel(x_ref, w1_ref, b1_ref, w2_ref, b2_ref, wh_ref, bh_ref,
                    q_ref, *, action_dim):
    # MXU feeds are bf16; accumulation, bias-add and ReLU stay in f32.
    x = x_ref[...].astype(jnp.bfloat16)                                # (M, S)

    # hidden layer 1: Linear + ReLU
    h1 = jnp.dot(x, w1_ref[...], preferred_element_type=jnp.float32) + b1_ref[...]
    h1 = jnp.maximum(h1, 0.0).astype(jnp.bfloat16)                     # (M, H)

    # hidden layer 2: Linear + ReLU
    h2 = jnp.dot(h1, w2_ref[...], preferred_element_type=jnp.float32) + b2_ref[...]
    h2 = jnp.maximum(h2, 0.0).astype(jnp.bfloat16)                     # (M, H)

    # fused value+advantage head: cols [0, A) = advantage, last col = value,
    # all other columns exactly zero.
    head = jnp.dot(h2, wh_ref[...], preferred_element_type=jnp.float32) + bh_ref[...]

    v_col = head.shape[-1] - 1
    value = head[:, v_col:v_col + 1]                                   # (M, 1)
    # padded columns are exactly zero, so sum(head) - value == sum(advantage)
    adv_sum = jnp.sum(head, axis=-1, keepdims=True) - value
    adv_mean = adv_sum * (1.0 / action_dim)

    # q[:, j] = value + adv[j] - adv_mean for j < A; the remaining columns carry
    # garbage but keep the store lane-dense (128-wide, unmasked vst); they are
    # never read by the consumer.
    q_ref[...] = head + (value - adv_mean)


# --------------------------------------------------------------------------- #
# Wrapper                                                                      #
# --------------------------------------------------------------------------- #
def dueling_double_dqn_forward(state, packed, *, action_dim, slice_output=True):
    """state: (B, state_dim) f32. packed: head-fused / bf16-cast params."""
    B, S = state.shape
    H = packed["w1"].shape[1]
    o_pad = packed["wh"].shape[1]

    # M-tile selection:
    #  * small batches: one full-array tile (zero wasted rows, one grid step)
    #  * large batches: 512-row tiles -> grid_m >= 2, so the "parallel" axis can
    #    shard across both v7x TensorCores; the partial last tile is handled by
    #    Pallas block masking (no batch padding, no padded-input HBM copy).
    tile_m = B if B <= 512 else 512
    grid_m = pl.cdiv(B, tile_m)

    in_specs = [
        pl.BlockSpec((tile_m, S), lambda i: (i, 0)),   # state tile (streams, natural K)
        pl.BlockSpec((S, H), lambda i: (0, 0)),        # w1 (bf16, resident)
        pl.BlockSpec((1, H), lambda i: (0, 0)),        # b1 (f32,  resident)
        pl.BlockSpec((H, H), lambda i: (0, 0)),        # w2 (bf16, resident)
        pl.BlockSpec((1, H), lambda i: (0, 0)),        # b2 (f32,  resident)
        pl.BlockSpec((H, o_pad), lambda i: (0, 0)),    # fused head weight (bf16)
        pl.BlockSpec((1, o_pad), lambda i: (0, 0)),    # fused head bias (f32)
    ]
    out_spec = pl.BlockSpec((tile_m, o_pad), lambda i: (i, 0))

    q_pad = pl.pallas_call(
        partial(_dueling_kernel, action_dim=action_dim),
        grid=(grid_m,),
        in_specs=in_specs,
        out_specs=out_spec,
        out_shape=jax.ShapeDtypeStruct((B, o_pad), jnp.float32),
        compiler_params=pltpu.CompilerParams(
            dimension_semantics=("parallel",)),   # v7x: shard batch tiles over both TCs
    )(state, packed["w1"], packed["b1"], packed["w2"], packed["b2"],
      packed["wh"], packed["bh"])

    if not slice_output:
        # Perf-sensitive consumers (loss / argmax) should take the padded block
        # and fuse their own [:, :action_dim] slice instead of forcing a
        # separate strided copy here.
        return q_pad
    return q_pad[:, :action_dim]


# --------------------------------------------------------------------------- #
# Params: logical (unpadded) init + head-fused / bf16 packing                  #
# --------------------------------------------------------------------------- #
def init_params(key, state_dim, hidden_dim, action_dim):
    """PyTorch-nn.Linear-style init; weights stored pre-transposed (in, out)."""
    keys = jax.random.split(key, 8)

    def linear(kw, kb, fan_in, fan_out):
        bound = 1.0 / math.sqrt(fan_in)
        w = jax.random.uniform(kw, (fan_in, fan_out), jnp.float32, -bound, bound)
        b = jax.random.uniform(kb, (1, fan_out), jnp.float32, -bound, bound)
        return w, b

    w1, b1 = linear(keys[0], keys[1], state_dim, hidden_dim)
    w2, b2 = linear(keys[2], keys[3], hidden_dim, hidden_dim)
    wv, bv = linear(keys[4], keys[5], hidden_dim, 1)
    wa, ba = linear(keys[6], keys[7], hidden_dim, action_dim)
    return {"w1": w1, "b1": b1, "w2": w2, "b2": b2,
            "wv": wv, "bv": bv, "wa": wa, "ba": ba}


def pack_params(params):
    """Fuse the two heads and cast matmul weights to bf16 (biases stay f32)."""
    h = params["w1"].shape[1]
    a = params["wa"].shape[1]
    o_pad = _round_up(a + 1, LANE)   # only the stored output dim is lane-padded

    packed = {
        "w1": params["w1"].astype(jnp.bfloat16),
        "b1": params["b1"].astype(jnp.float32),
        "w2": params["w2"].astype(jnp.bfloat16),
        "b2": params["b2"].astype(jnp.float32),
    }
    # fused head: columns [0, A) = advantage weights, last column = value weights,
    # everything in between exactly zero (zeros survive the bf16 cast exactly,
    # which keeps the sum-minus-value dueling-mean trick exact).
    wh = jnp.zeros((h, o_pad), jnp.float32)
    wh = wh.at[:, :a].set(params["wa"])
    wh = wh.at[:, o_pad - 1:o_pad].set(params["wv"])
    bh = jnp.zeros((1, o_pad), jnp.float32)
    bh = bh.at[:, :a].set(params["ba"])
    bh = bh.at[:, o_pad - 1:o_pad].set(params["bv"])
    packed["wh"] = wh.astype(jnp.bfloat16)
    packed["bh"] = bh
    return packed


def reference_forward(state, params):
    """Pure-JAX f32 reference implementing the PyTorch module semantics."""
    h1 = jnp.maximum(state @ params["w1"] + params["b1"], 0.0)
    h2 = jnp.maximum(h1 @ params["w2"] + params["b2"], 0.0)
    value = h2 @ params["wv"] + params["bv"]
    adv = h2 @ params["wa"] + params["ba"]
    return value + (adv - adv.mean(axis=-1, keepdims=True))


if __name__ == "__main__":
    # args.state_dim=16, args.hidden_dim=32, args.action_dim=4, batch=2
    batch, state_dim, hidden_dim, action_dim = 2, 16, 32, 4

    key = jax.random.PRNGKey(0)
    k_state, k_params, k_mid, k_big = jax.random.split(key, 4)

    params = init_params(k_params, state_dim, hidden_dim, action_dim)
    packed = pack_params(params)

    # bf16 MXU feeds -> compare against the f32 reference with a loosened tol.
    TOL = 3e-2

    # small (spec) shapes — single full-array tile, grid=1
    state = jax.random.normal(k_state, (batch, state_dim), dtype=jnp.float32)
    q = dueling_double_dqn_forward(state, packed, action_dim=action_dim)
    q = jax.block_until_ready(q)
    q_ref = reference_forward(state, params)
    assert q.shape == (batch, action_dim)
    assert jnp.allclose(q, q_ref, atol=TOL, rtol=TOL), "mismatch vs reference (small)"

    # medium batch (not a multiple of 8) — still one full-array tile, no padding
    mid_batch = 300
    mid_state = jax.random.normal(k_mid, (mid_batch, state_dim), dtype=jnp.float32)
    q_mid = dueling_double_dqn_forward(mid_state, packed, action_dim=action_dim)
    q_mid = jax.block_until_ready(q_mid)
    q_mid_ref = reference_forward(mid_state, params)
    assert q_mid.shape == (mid_batch, action_dim)
    assert jnp.allclose(q_mid, q_mid_ref, atol=TOL, rtol=TOL), "mismatch vs reference (mid)"

    # large batch — 512-row tiles, grid=3 with a masked partial last tile
    big_batch = 1100
    big_state = jax.random.normal(k_big, (big_batch, state_dim), dtype=jnp.float32)
    q_big = dueling_double_dqn_forward(big_state, packed, action_dim=action_dim)
    q_big = jax.block_until_ready(q_big)
    q_big_ref = reference_forward(big_state, params)
    assert q_big.shape == (big_batch, action_dim)
    assert jnp.allclose(q_big, q_big_ref, atol=TOL, rtol=TOL), "mismatch vs reference (big)"

    print("KERNEL_OK")
</pallas_src>

<mosaic_0001>
module attributes {stable_mosaic.version = 11 : i64} {
  func.func @_dueling_kernel(%arg0: i32, %arg1: memref<2x16xf32, #tpu.memory_space<vmem>>, %arg2: memref<16x32xbf16, #tpu.memory_space<vmem>>, %arg3: memref<1x32xf32, #tpu.memory_space<vmem>>, %arg4: memref<32x32xbf16, #tpu.memory_space<vmem>>, %arg5: memref<1x32xf32, #tpu.memory_space<vmem>>, %arg6: memref<32x128xbf16, #tpu.memory_space<vmem>>, %arg7: memref<1x128xf32, #tpu.memory_space<vmem>>, %arg8: memref<2x128xf32, #tpu.memory_space<vmem>>) attributes {dimension_semantics = [#tpu.dimension_semantics<parallel>], iteration_bounds = array<i64: 1>, scalar_prefetch = 0 : i64, scratch_operands = 0 : i64, tpu.core_type = #tpu.core_type<tc>, window_params = [{transform_indices = @transform_0, window_bounds = array<i64: 2, 16>}, {pipeline_mode = #tpu.pipeline_mode<synchronous>, transform_indices = @transform_1, window_bounds = array<i64: 16, 32>}, {pipeline_mode = #tpu.pipeline_mode<synchronous>, transform_indices = @transform_2, window_bounds = array<i64: 1, 32>}, {pipeline_mode = #tpu.pipeline_mode<synchronous>, transform_indices = @transform_3, window_bounds = array<i64: 32, 32>}, {pipeline_mode = #tpu.pipeline_mode<synchronous>, transform_indices = @transform_4, window_bounds = array<i64: 1, 32>}, {pipeline_mode = #tpu.pipeline_mode<synchronous>, transform_indices = @transform_5, window_bounds = array<i64: 32, 128>}, {pipeline_mode = #tpu.pipeline_mode<synchronous>, transform_indices = @transform_6, window_bounds = array<i64: 1, 128>}, {transform_indices = @transform_7, window_bounds = array<i64: 2, 128>}]} {
    %c0 = arith.constant 0 : index
    %c0_0 = arith.constant 0 : index
    %0 = vector.load %arg1[%c0, %c0_0] : memref<2x16xf32, #tpu.memory_space<vmem>>, vector<2x16xf32>
    %1 = arith.truncf %0 : vector<2x16xf32> to vector<2x16xbf16>
    %c0_1 = arith.constant 0 : index
    %c0_2 = arith.constant 0 : index
    %2 = vector.load %arg2[%c0_1, %c0_2] : memref<16x32xbf16, #tpu.memory_space<vmem>>, vector<16x32xbf16>
    %cst = arith.constant dense<0.000000e+00> : vector<2x32xf32>
    %3 = tpu.matmul %1, %2, %cst {dimension_numbers = #tpu.dot_dimension_numbers<[1], [0], [0], [1], [0, 0, 1, 1], [], []>} : vector<2x16xbf16>, vector<16x32xbf16>, vector<2x32xf32> -> vector<2x32xf32>
    %c0_3 = arith.constant 0 : index
    %c0_4 = arith.constant 0 : index
    %4 = vector.load %arg3[%c0_3, %c0_4] : memref<1x32xf32, #tpu.memory_space<vmem>>, vector<1x32xf32>
    %5 = vector.broadcast %4 : vector<1x32xf32> to vector<2x32xf32>
    %6 = arith.addf %3, %5 : vector<2x32xf32>
    %cst_5 = arith.constant 0.000000e+00 : f32
    %7 = vector.broadcast %cst_5 : f32 to vector<2x32xf32>
    %8 = arith.maximumf %6, %7 : vector<2x32xf32>
    %9 = arith.truncf %8 : vector<2x32xf32> to vector<2x32xbf16>
    %c0_6 = arith.constant 0 : index
    %c0_7 = arith.constant 0 : index
    %10 = vector.load %arg4[%c0_6, %c0_7] : memref<32x32xbf16, #tpu.memory_space<vmem>>, vector<32x32xbf16>
    %cst_8 = arith.constant dense<0.000000e+00> : vector<2x32xf32>
    %11 = tpu.matmul %9, %10, %cst_8 {dimension_numbers = #tpu.dot_dimension_numbers<[1], [0], [0], [1], [0, 0, 1, 1], [], []>} : vector<2x32xbf16>, vector<32x32xbf16>, vector<2x32xf32> -> vector<2x32xf32>
    %c0_9 = arith.constant 0 : index
    %c0_10 = arith.constant 0 : index
    %12 = vector.load %arg5[%c0_9, %c0_10] : memref<1x32xf32, #tpu.memory_space<vmem>>, vector<1x32xf32>
    %13 = vector.broadcast %12 : vector<1x32xf32> to vector<2x32xf32>
    %14 = arith.addf %11, %13 : vector<2x32xf32>
    %cst_11 = arith.constant 0.000000e+00 : f32
    %15 = vector.broadcast %cst_11 : f32 to vector<2x32xf32>
    %16 = arith.maximumf %14, %15 : vector<2x32xf32>
    %17 = arith.truncf %16 : vector<2x32xf32> to vector<2x32xbf16>
    %c0_12 = arith.constant 0 : index
    %c0_13 = arith.constant 0 : index
    %18 = vector.load %arg6[%c0_12, %c0_13] : memref<32x128xbf16, #tpu.memory_space<vmem>>, vector<32x128xbf16>
    %cst_14 = arith.constant dense<0.000000e+00> : vector<2x128xf32>
    %19 = tpu.matmul %17, %18, %cst_14 {dimension_numbers = #tpu.dot_dimension_numbers<[1], [0], [0], [1], [0, 0, 1, 1], [], []>} : vector<2x32xbf16>, vector<32x128xbf16>, vector<2x128xf32> -> vector<2x128xf32>
    %c0_15 = arith.constant 0 : index
    %c0_16 = arith.constant 0 : index
    %20 = vector.load %arg7[%c0_15, %c0_16] : memref<1x128xf32, #tpu.memory_space<vmem>>, vector<1x128xf32>
    %21 = vector.broadcast %20 : vector<1x128xf32> to vector<2x128xf32>
    %22 = arith.addf %19, %21 : vector<2x128xf32>
    %23 = vector.extract_strided_slice %22 {offsets = [0, 127], sizes = [2, 1], strides = [1, 1]} : vector<2x128xf32> to vector<2x1xf32>
    %cst_17 = arith.constant dense<0.000000e+00> : vector<2xf32>
    %24 = vector.multi_reduction <add>, %22, %cst_17 [1] : vector<2x128xf32> to vector<2xf32>
    %25 = vector.shape_cast %24 : vector<2xf32> to vector<2x1xf32>
    %26 = arith.subf %25, %23 : vector<2x1xf32>
    %cst_18 = arith.constant 2.500000e-01 : f32
    %27 = vector.broadcast %cst_18 : f32 to vector<2x1xf32>
    %28 = arith.mulf %26, %27 : vector<2x1xf32>
    %29 = arith.subf %23, %28 : vector<2x1xf32>
    %30 = vector.broadcast %29 : vector<2x1xf32> to vector<2x128xf32>
    %31 = arith.addf %22, %30 : vector<2x128xf32>
    %c0_19 = arith.constant 0 : index
    %c0_20 = arith.constant 0 : index
    %32 = vector.load %arg8[%c0_19, %c0_20] : memref<2x128xf32, #tpu.memory_space<vmem>>, vector<2x128xf32>
    tpu.vector_store %arg8[%c0_19, %c0_20], %31 {strides = array<i32>} : memref<2x128xf32, #tpu.memory_space<vmem>>, vector<2x128xf32>,
    return
  }
  func.func @transform_0(%arg0: i32) -> (i32, i32) {
    %c0_i32 = arith.constant 0 : i32
    %c0_i32_0 = arith.constant 0 : i32
    return %arg0, %c0_i32 : i32, i32
  }
  func.func @transform_1(%arg0: i32) -> (i32, i32) {
    %c0_i32 = arith.constant 0 : i32
    %c0_i32_0 = arith.constant 0 : i32
    %c0_i32_1 = arith.constant 0 : i32
    return %c0_i32, %c0_i32_0 : i32, i32
  }
  func.func @transform_2(%arg0: i32) -> (i32, i32) {
    %c0_i32 = arith.constant 0 : i32
    %c0_i32_0 = arith.constant 0 : i32
    %c0_i32_1 = arith.constant 0 : i32
    return %c0_i32, %c0_i32_0 : i32, i32
  }
  func.func @transform_3(%arg0: i32) -> (i32, i32) {
    %c0_i32 = arith.constant 0 : i32
    %c0_i32_0 = arith.constant 0 : i32
    %c0_i32_1 = arith.constant 0 : i32
    return %c0_i32, %c0_i32_0 : i32, i32
  }
  func.func @transform_4(%arg0: i32) -> (i32, i32) {
    %c0_i32 = arith.constant 0 : i32
    %c0_i32_0 = arith.constant 0 : i32
    %c0_i32_1 = arith.constant 0 : i32
    return %c0_i32, %c0_i32_0 : i32, i32
  }
  func.func @transform_5(%arg0: i32) -> (i32, i32) {
    %c0_i32 = arith.constant 0 : i32
    %c0_i32_0 = arith.constant 0 : i32
    %c0_i32_1 = arith.constant 0 : i32
    return %c0_i32, %c0_i32_0 : i32, i32
  }
  func.func @transform_6(%arg0: i32) -> (i32, i32) {
    %c0_i32 = arith.constant 0 : i32
    %c0_i32_0 = arith.constant 0 : i32
    %c0_i32_1 = arith.constant 0 : i32
    return %c0_i32, %c0_i32_0 : i32, i32
  }
  func.func @transform_7(%arg0: i32) -> (i32, i32) {
    %c0_i32 = arith.constant 0 : i32
    %c0_i32_0 = arith.constant 0 : i32
    return %arg0, %c0_i32 : i32, i32
  }
}

</mosaic_0001>

<bundles_post_ra>
// kernel: tpu_custom_call.1
= control target key start
LH: loop header
LB: loop body
LE: loop exit
PB: predicated region body
PF: predicated region fallthrough
CT: control target
= control target key end

     0   :  { %12 = vsyncpa [#allocation3], 0  ;;  %s563_s0 = inlined_call_operand.hbm [shape: f32[2,16], index: 0, kind: input, shape index: {}]   ;;  %s564_s1 = inlined_call_operand.hbm [shape: bf16[16,32], index: 1, kind: input, shape index: {}]   ;;  %s565_s2 = inlined_call_operand.vmem [shape: f32[1,32], index: 2, kind: input, shape index: {}]   ;;  %s566_s3 = inlined_call_operand.hbm [shape: bf16[32,32], index: 3, kind: input, shape index: {}]   ;;  %s567_s4 = inlined_call_operand.vmem [shape: f32[1,32], index: 4, kind: input, shape index: {}]   ;;  %s568_s5 = inlined_call_operand.vmem [shape: bf16[32,128], index: 5, kind: input, shape index: {}]   ;;  %s569_s6 = inlined_call_operand.vmem [shape: f32[1,128], index: 6, kind: input, shape index: {}]   ;;  %s570_s7 = inlined_call_operand.hbm [shape: f32[2,128], index: 7, kind: output, shape index: {}]  }
   0x1   :  { %13 = vsyncpa [#allocation6], 0 }
   0x2   :  { %14 = vsyncpa [#allocation4], 0  ;;  %s445_s24 = smov [#allocation5]   ;;  %s351_s28 = scalar_lea.hbm %s564_s1, 128 }
   0x3   :  { %s30_s25 = sshll.u32 %s445_s24, 4  ;;  %p352_p0 = scmp.ne.s32.totalorder %s564_s1, %s351_s28  ;;  %s31_s25 = int_to_ptr.vmem [resolvable:$true] %s30_s25 }
   0x4   :  { %p355_p1 = scmp.lt.u32.totalorder %s351_s28, %s564_s1 }
   0x6   :  { %p357_p2 = pnand %p355_p1, %p352_p0 }
   0x8   :  { %360 = shalt.err (!%p357_p2)
}
   0x9   :  { %s361_s10 = scalar_lea.vmem %s31_s25, 128  ;;  %p366_p4 = scmp.lt.s32.totalorder %s31_s25, %s31_s25 }
   0xa   :  { %p362_p3 = scmp.ne.s32.totalorder %s31_s25, %s361_s10  ;;  %p367_p5 = scmp.lt.s32.totalorder %s361_s10, %s361_s10 }
   0xc   :  { %p368_p6 = por %p367_p5, %p366_p4 }
   0xe   :  { %p369_p7 = pnand %p368_p6, %p362_p3 }
  0x10   :  { %372 = shalt.err (!%p369_p7)
}
  0x11   :  { %s446_s11 = smov 64   ;;  %s447_s12 = smov 4  }
  0x12   :  { %36 = dma.hbm_to_vmem [thread:$0]  %s564_s1, 128, %s31_s25, [#allocation6], %s446_s11, %s446_s11, %s447_s12  }
  0x13   :  { %s448_s15 = smov [#allocation2]   ;;  %s449_s17 = smov [#allocation7]  }
  0x14   :  { %s21_s16 = sshll.u32 %s448_s15, 4  ;;  %s44_s18 = sshll.u32 %s449_s17, 4  ;;  %s22_s16 = int_to_ptr.vmem [resolvable:$true] %s21_s16  ;;  %s45_s18 = int_to_ptr.vmem [resolvable:$true] %s44_s18 }
  0x15   :  { %s373_s21 = scalar_lea.hbm %s563_s0, 32 }
  0x16   :  { %p374_p8 = scmp.ne.s32.totalorder %s563_s0, %s373_s21  ;;  %p377_p9 = scmp.lt.u32.totalorder %s373_s21, %s563_s0 }
  0x18   :  { %p379_p10 = pnand %p377_p9, %p374_p8 }
  0x1a   :  { %382 = shalt.err (!%p379_p10)
}
  0x1b   :  { %s383_s1 = scalar_lea.vmem %s22_s16, 32  ;;  %p388_p12 = scmp.lt.s32.totalorder %s22_s16, %s22_s16 }
  0x1c   :  { %p384_p11 = scmp.ne.s32.totalorder %s22_s16, %s383_s1  ;;  %p389_p13 = scmp.lt.s32.totalorder %s383_s1, %s383_s1 }
  0x1e   :  { %p390_p0 = por %p389_p13, %p388_p12 }
  0x20   :  { %p391_p1 = pnand %p390_p0, %p384_p11 }
  0x22   :  { %394 = shalt.err (!%p391_p1)
}
  0x23   :  { %24 = dma.hbm_to_vmem [thread:$0]  %s563_s0, 32, %s22_s16, [#allocation3]  }
  0x24   :  { %s395_s30 = scalar_lea.hbm %s566_s3, 256 }
  0x25   :  { %p396_p2 = scmp.ne.s32.totalorder %s566_s3, %s395_s30  ;;  %p399_p3 = scmp.lt.u32.totalorder %s395_s30, %s566_s3 }
  0x27   :  { %p401_p4 = pnand %p399_p3, %p396_p2 }
  0x29   :  { %404 = shalt.err (!%p401_p4)
}
  0x2a   :  { %s405_s14 = scalar_lea.vmem %s45_s18, 256  ;;  %p410_p6 = scmp.lt.s32.totalorder %s45_s18, %s45_s18 }
  0x2b   :  { %p406_p5 = scmp.ne.s32.totalorder %s45_s18, %s405_s14  ;;  %p411_p7 = scmp.lt.s32.totalorder %s405_s14, %s405_s14 }
  0x2d   :  { %p412_p8 = por %p411_p7, %p410_p6 }
  0x2f   :  { %p413_p9 = pnand %p412_p8, %p406_p5 }
  0x31   :  { %416 = shalt.err (!%p413_p9)
}
  0x32   :  { %50 = dma.hbm_to_vmem [thread:$0]  %s566_s3, 256, %s45_s18, [#allocation6], %s446_s11, %s446_s11, %s447_s12  }
  0x33   :  { %439 = dma.done.wait [#allocation3], 32  }
  0x34   :  { %440 = vsyncadd [#allocation3], 4294967264 }
  0x35   :  { %441 = dma.done.wait [#allocation6], 384  }
  0x36   :  { %442 = vsyncadd [#allocation6], 4294966912  ;;  %v450_v0 = vmov 0.0   ;;  %vm451_vm0 = vmmov 0   ;;  %v346_v1 = vld [vmem:[#allocation5] sm:$0xff]   ;;  %vm84_vm1 = vcmask 130048  }
  0x37   :  { %314 = vmatprep.subr.bf16.mxu0 %v450_v0  ;;  %316 = vmatprep.mubr.msk.bf16.mxu0 %vm451_vm0, %v450_v0  ;;  %v67_v2 = vld [vmem:[#allocation2] sm:$0x3]  ;;  %v347_v4 = vld [vmem:[#allocation7] sm:$0xff]   ;;  %v348_v5 = vld [vmem:[#allocation7 + $0x8] sm:$0xff]   ;;  %vm153_vm2 = vcmask 261120   ;;  %vm265_vm3 = vcmask 1041408  }
  0x38   :  { %320 = vmatprep.subr.bf16.mxu1 %v450_v0  ;;  %324 = vmatprep.mubr.msk.bf16.mxu1 %vm451_vm0, %v450_v0  ;;  %v68_v3 = vpack.c.bf16 %v67_v2, %v67_v2  ;;  %v349_v6 = vld [vmem:[%s568_s5] sm:$0xff]   ;;  %v350_v15 = vld [vmem:[%s568_s5 + $0x8] sm:$0xff]   ;;  %v452_v31 = vmov 127  }
  0x39   :  { %315 = vmatpush3.bf16.msra.mxu0 %v346_v1  ;;  %321 = vmatpush3.bf16.msra.mxu1 %v347_v4  ;;  %v295_v7 = vld [vmem:[%s565_s2] ss:$0 sm:$0xff] }
  0x3a   :  { %328 = vmatprep.subr.bf16.mxu0 %v450_v0  ;;  %322 = vmatprep.subr.bf16.mxu1 %v450_v0  ;;  %v298_v16 = vld [vmem:[%s567_s4] ss:$0 sm:$0xff]  ;;  %s453_s4 = smov [#allocation8]  }
  0x3b   :  { %v302_v24 = vld [vmem:[%s569_s6] ss:$0 sm:$0xff]  ;;  %345 = vset.pattern.permute.xlu0 %v452_v31  ;;  %s285_s5 = sshll.u32 %s453_s4, 4  ;;  %s286_s5 = int_to_ptr.vmem [resolvable:$true] %s285_s5 }
  0x3c   :  { %317 = vmatmul.mubr.msk.bf16.vlgmr.msra.gmra.mrb[0].mxu0 %vm84_vm1, %v68_v3  ;;  %s417_s6 = scalar_lea.vmem %s286_s5, 32  ;;  %p422_p11 = scmp.lt.s32.totalorder %s286_s5, %s286_s5 }
  0x3d   :  { %332 = vmatprep.mubr.msk.bf16.mxu0 %vm451_vm0, %v450_v0  ;;  %323 = vmatpush3.bf16.msra.mxu1 %v348_v5  ;;  %p418_p10 = scmp.ne.s32.totalorder %s286_s5, %s417_s6  ;;  %p423_p12 = scmp.lt.s32.totalorder %s417_s6, %s417_s6 }
  0x3e   :  { %329 = vmatpush3.bf16.msra.mxu0 %v349_v6 }
  0x3f   :  { %330 = vmatprep.subr.bf16.mxu0 %v450_v0  ;;  %p424_p13 = por %p423_p12, %p422_p11 }
  0x41   :  { %p425_p0 = pnand %p424_p13, %p418_p10 }
  0x42   :  { %331 = vmatpush3.bf16.msra.mxu0 %v350_v15 }
 0x10f   :  { %v122_v8 = vpop.f32.mrb[0].mxu0 }
 0x110   :  { %v123_v9 = vadd.f32 %v295_v7, %v122_v8  ;;  %v318_v10 = vpop.f32.mrb[1].mxu0 }
 0x111   :  { %v125_v11 = vpop.f32.mrb[2].mxu0 }
 0x112   :  { %v128_v12 = vmax.f32 %v123_v9, 0.0  ;;  %v319_v13 = vpop.f32.mrb[3].mxu0 }
 0x114   :  { %v129_v14 = vpack.c.bf16 %v128_v12, %v128_v12 }
 0x116   :  { %325 = vmatmul.mubr.msk.bf16.vlgmr.msra.gmra.mrb[0].mxu1 %vm153_vm2, %v129_v14 }
 0x1e9   :  { %v191_v17 = vpop.f32.mrb[0].mxu1 }
 0x1ea   :  { %v192_v18 = vadd.f32 %v298_v16, %v191_v17  ;;  %v326_v19 = vpop.f32.mrb[1].mxu1 }
 0x1eb   :  { %v194_v20 = vpop.f32.mrb[2].mxu1 }
 0x1ec   :  { %v197_v21 = vmax.f32 %v192_v18, 0.0  ;;  %v327_v22 = vpop.f32.mrb[3].mxu1 }
 0x1ee   :  { %v198_v23 = vpack.c.bf16 %v197_v21, %v197_v21 }
 0x1f0   :  { %333 = vmatmul.mubr.msk.bf16.vlgmr.msra.gmra.mrb[4].mxu0 %vm153_vm2, %v198_v23 }
 0x2c3   :  { %v259_v25 = vpop.f32.mrb[4].mxu0 }
 0x2c4   :  { %v260_v26 = vadd.f32 %v302_v24, %v259_v25  ;;  %v334_v27 = vpop.f32.mrb[5].mxu0 }
 0x2c5   :  { %v262_v28 = vpop.f32.mrb[6].mxu0 }
 0x2c6   :  { %v335_v29 = vpop.f32.mrb[7].mxu0  ;;  %v266_v30 = vsel %vm265_vm3, %v260_v26, 0.0 }
 0x2c7   :  { %267 = vadd.xlane.f32.xlu0 %v266_v30 }
 0x354   :  { %v268_v32 = vpop.xlane.xlu0 %267 }
 0x355   :  { %v269_v33 = vsub.f32 %v268_v32, %v260_v26 }
 0x357   :  { %v270_v34 = vmul.f32 0.25, %v269_v33 }
 0x359   :  { %v271_v35 = vsub.f32 %v260_v26, %v270_v34 }
 0x35b   :  { %274 = vperm.xlu0 %345, %v271_v35  }
 0x3da   :  { %v275_v36 = vpop.permute.xlu0 %274 }
 0x3db   :  { %v277_v37 = vadd.f32 %v275_v36, %v260_v26 }
 0x3dd   :  { %278 = vst [vmem:[#allocation8] sm:$0x3] %v277_v37 }
 0x3de   :  { %428 = shalt.err (!%p425_p0)
}
 0x3df   :  { %s429_s24 = scalar_lea.hbm %s570_s7, 32 }
 0x3e0   :  { %p430_p1 = scmp.ne.s32.totalorder %s570_s7, %s429_s24  ;;  %p433_p2 = scmp.lt.u32.totalorder %s429_s24, %s570_s7 }
 0x3e2   :  { %p435_p3 = pnand %p433_p2, %p430_p1 }
 0x3e4   :  { %438 = shalt.err (!%p435_p3)
}
 0x3e5   :  { %288 = dma.vmem_to_hbm [thread:$0]  %s286_s5, 32, %s570_s7, [#allocation4]  }
 0x3e6   :  { %443 = dma.done.wait [#allocation4], 32  }
 0x3e7   :  { %444 = vsyncadd [#allocation4], 4294967264 }
 0x3e8   :  { %292 = vsyncpa [#allocation3], 1 }
 0x3e9   :  { %293 = vsyncpa [#allocation6], 1 }
 0x3ea   :  { %294 = vsyncpa [#allocation4], 1 }

</bundles_post_ra>
